<compile_context>
chip_gen: v7x
topology: tpu7x:2x2x1
jax: 0.10.0
libtpu: 0.0.40
codegen_flags: <defaults>
</compile_context>

<pallas_src>
import jax
import jax.numpy as jnp
from jax.experimental import pallas as pl
from jax.experimental.pallas import tpu as pltpu


# ---------------------------------------------------------------------------
# Kernels
# ---------------------------------------------------------------------------
def _ffn_kernel_single(x_ref, w_ref, b_ref, o_ref):
    """Whole contraction in one block: fused matmul + bias + ReLU."""
    y = jnp.dot(x_ref[...], w_ref[...], preferred_element_type=jnp.float32)
    y = y + b_ref[...]                              # f32 bias add (VPU)
    o_ref[...] = jnp.maximum(y, 0.0).astype(o_ref.dtype)


def _ffn_kernel_ktiled(x_ref, w_ref, b_ref, o_ref, acc_ref):
    """One (row-tile, k-tile) grid step of relu(x @ w + b)."""
    k = pl.program_id(1)

    @pl.when(k == 0)
    def _init():
        acc_ref[...] = jnp.zeros_like(acc_ref)

    # bf16 x bf16 -> f32 accumulation on the MXU.
    acc_ref[...] += jnp.dot(
        x_ref[...], w_ref[...], preferred_element_type=jnp.float32
    )

    @pl.when(k == pl.num_programs(1) - 1)
    def _epilogue():
        y = acc_ref[...] + b_ref[...]
        o_ref[...] = jnp.maximum(y, 0.0).astype(o_ref.dtype)


# ---------------------------------------------------------------------------
# Tile selection
# ---------------------------------------------------------------------------
def _pick_row_tile(m, c):
    """Largest 8-aligned row tile that keeps the per-step working set modest."""
    if m <= 512:
        return m                      # single block == full dim (layout-legal)
    # Shrink the row tile for very wide layers so double-buffered x/out tiles
    # plus the f32 accumulator stay comfortably inside VMEM.
    if c >= 4096:
        return 256
    return 512


def _pick_k_tile(c):
    """Whole contraction in one block when it fits; otherwise 128-aligned tiles."""
    if c <= 1024:
        return c
    for cand in (512, 256, 128):
        if c % cand == 0:
            return cand
    return c                          # irregular C: fall back to one K block


# ---------------------------------------------------------------------------
# Wrapper
# ---------------------------------------------------------------------------
def feed_forward(x, w, b, *, compute_dtype=jnp.bfloat16):
    """relu(x @ w + b).  x: (B, T, C); w: (C, C) stored (in, out); b: (C,)."""
    B, T, C = x.shape
    M = B * T

    tm = _pick_row_tile(M, C)
    tk = _pick_k_tile(C)
    num_k = pl.cdiv(C, tk)

    x2d = x.reshape(M, C).astype(compute_dtype)
    w_c = w.astype(compute_dtype)
    b2d = b.reshape(1, C).astype(jnp.float32)

    in_bytes = jnp.dtype(compute_dtype).itemsize
    out_bytes = jnp.dtype(x.dtype).itemsize

    if num_k == 1:
        # ------ fused single-pass path (no accumulator, 1-D grid) ------------
        grid = (pl.cdiv(M, tm),)
        vmem_need = (
            2 * tm * C * in_bytes       # x tile (double-buffered)
            + 2 * C * C * in_bytes      # weight (resident)
            + 2 * C * 4                 # bias
            + 2 * tm * C * out_bytes    # output tile (double-buffered)
        )
        vmem_limit = min(max(int(vmem_need * 1.3), 32 << 20), 64 << 20)

        out = pl.pallas_call(
            _ffn_kernel_single,
            out_shape=jax.ShapeDtypeStruct((M, C), x.dtype),
            grid=grid,
            in_specs=[
                pl.BlockSpec((tm, C), lambda i: (i, 0)),   # x rows
                pl.BlockSpec((C, C), lambda i: (0, 0)),    # weight (resident)
                pl.BlockSpec((1, C), lambda i: (0, 0)),    # bias (resident)
            ],
            out_specs=pl.BlockSpec((tm, C), lambda i: (i, 0)),
            compiler_params=pltpu.CompilerParams(
                dimension_semantics=("parallel",),
                vmem_limit_bytes=vmem_limit,
            ),
        )(x2d, w_c, b2d)
    else:
        # ------ K-tiled path with resident f32 accumulator --------------------
        grid = (pl.cdiv(M, tm), num_k)   # reduction axis last
        vmem_need = (
            2 * tm * tk * in_bytes      # x tile (double-buffered)
            + 2 * tk * C * in_bytes     # w tile (double-buffered)
            + 2 * C * 4                 # bias
            + 2 * tm * C * out_bytes    # output tile (double-buffered)
            + tm * C * 4                # accumulator scratch
        )
        vmem_limit = min(max(int(vmem_need * 1.3), 32 << 20), 64 << 20)

        out = pl.pallas_call(
            _ffn_kernel_ktiled,
            out_shape=jax.ShapeDtypeStruct((M, C), x.dtype),
            grid=grid,
            in_specs=[
                pl.BlockSpec((tm, tk), lambda i, k: (i, k)),   # x rows
                pl.BlockSpec((tk, C), lambda i, k: (k, 0)),    # weight (resident in i)
                pl.BlockSpec((1, C), lambda i, k: (0, 0)),     # bias (resident)
            ],
            out_specs=pl.BlockSpec((tm, C), lambda i, k: (i, 0)),
            scratch_shapes=[pltpu.VMEM((tm, C), jnp.float32)],
            compiler_params=pltpu.CompilerParams(
                dimension_semantics=("parallel", "arbitrary"),
                vmem_limit_bytes=vmem_limit,
            ),
        )(x2d, w_c, b2d)

    return out.reshape(B, T, C)


# ---------------------------------------------------------------------------
# Self-test
# ---------------------------------------------------------------------------
if __name__ == "__main__":
    n_embd = 32
    B, T = 2, 8

    key = jax.random.PRNGKey(0)
    kx, kw, kb = jax.random.split(key, 3)

    # Deterministic init mimicking nn.Linear's uniform(-1/sqrt(C), 1/sqrt(C)).
    bound = 1.0 / jnp.sqrt(n_embd)
    # PyTorch Linear stores weight (out, in) and computes x @ W.T; we keep the
    # already-transposed (in, out) matrix so the kernel does x @ w directly.
    w = jax.random.uniform(kw, (n_embd, n_embd), jnp.float32, -bound, bound)
    b = jax.random.uniform(kb, (n_embd,), jnp.float32, -bound, bound)
    x = jax.random.normal(kx, (B, T, n_embd), jnp.float32)

    y = feed_forward(x, w, b)
    jax.block_until_ready(y)
    assert y.shape == (B, T, n_embd)

    # Tight check vs. a reference using the same bf16 inputs / f32 accumulation.
    y_ref_bf16 = jnp.maximum(
        jnp.dot(x.astype(jnp.bfloat16), w.astype(jnp.bfloat16),
                preferred_element_type=jnp.float32) + b, 0.0)
    assert jnp.allclose(y, y_ref_bf16, atol=1e-4, rtol=1e-4)

    # Coarse check vs. the pure-f32 reference (difference = bf16 input rounding).
    y_ref_f32 = jnp.maximum(x @ w + b, 0.0)
    assert jnp.allclose(y, y_ref_f32, atol=5e-2, rtol=5e-2)

    # Exercise the tiled row path: multiple row blocks (incl. a partial last
    # block) with a lane-dense C = 128 (single-K fused path).
    B2, T2, C2 = 4, 160, 128
    k2x, k2w, k2b = jax.random.split(jax.random.PRNGKey(1), 3)
    bound2 = 1.0 / jnp.sqrt(C2)
    w2 = jax.random.uniform(k2w, (C2, C2), jnp.float32, -bound2, bound2)
    b2 = jax.random.uniform(k2b, (C2,), jnp.float32, -bound2, bound2)
    x2 = jax.random.normal(k2x, (B2, T2, C2), jnp.float32)

    y2 = feed_forward(x2, w2, b2)
    jax.block_until_ready(y2)
    y2_ref = jnp.maximum(
        jnp.dot(x2.astype(jnp.bfloat16), w2.astype(jnp.bfloat16),
                preferred_element_type=jnp.float32) + b2, 0.0)
    assert y2.shape == (B2, T2, C2)
    assert jnp.allclose(y2, y2_ref, atol=1e-3, rtol=1e-3)

    # Exercise the K-tiled accumulator path: C = 2048 > 1024 -> tk = 512.
    B3, T3, C3 = 2, 320, 2048
    k3x, k3w, k3b = jax.random.split(jax.random.PRNGKey(2), 3)
    bound3 = 1.0 / jnp.sqrt(C3)
    w3 = jax.random.uniform(k3w, (C3, C3), jnp.float32, -bound3, bound3)
    b3 = jax.random.uniform(k3b, (C3,), jnp.float32, -bound3, bound3)
    x3 = jax.random.normal(k3x, (B3, T3, C3), jnp.float32)

    y3 = feed_forward(x3, w3, b3)
    jax.block_until_ready(y3)
    y3_ref = jnp.maximum(
        jnp.dot(x3.astype(jnp.bfloat16), w3.astype(jnp.bfloat16),
                preferred_element_type=jnp.float32) + b3, 0.0)
    assert y3.shape == (B3, T3, C3)
    assert jnp.allclose(y3, y3_ref, atol=2e-3, rtol=2e-3)

    print("KERNEL_OK")
</pallas_src>

<mosaic_0001>
module attributes {stable_mosaic.version = 11 : i64} {
  func.func @_ffn_kernel_single(%arg0: i32, %arg1: memref<16x32xbf16, #tpu.memory_space<vmem>>, %arg2: memref<32x32xbf16, #tpu.memory_space<vmem>>, %arg3: memref<1x32xf32, #tpu.memory_space<vmem>>, %arg4: memref<16x32xf32, #tpu.memory_space<vmem>>) attributes {dimension_semantics = [#tpu.dimension_semantics<parallel>], iteration_bounds = array<i64: 1>, scalar_prefetch = 0 : i64, scratch_operands = 0 : i64, tpu.core_type = #tpu.core_type<tc>, window_params = [{transform_indices = @transform_0, window_bounds = array<i64: 16, 32>}, {pipeline_mode = #tpu.pipeline_mode<synchronous>, transform_indices = @transform_1, window_bounds = array<i64: 32, 32>}, {pipeline_mode = #tpu.pipeline_mode<synchronous>, transform_indices = @transform_2, window_bounds = array<i64: 1, 32>}, {transform_indices = @transform_3, window_bounds = array<i64: 16, 32>}]} {
    %c0 = arith.constant 0 : index
    %c0_0 = arith.constant 0 : index
    %0 = vector.load %arg1[%c0, %c0_0] : memref<16x32xbf16, #tpu.memory_space<vmem>>, vector<16x32xbf16>
    %c0_1 = arith.constant 0 : index
    %c0_2 = arith.constant 0 : index
    %1 = vector.load %arg2[%c0_1, %c0_2] : memref<32x32xbf16, #tpu.memory_space<vmem>>, vector<32x32xbf16>
    %cst = arith.constant dense<0.000000e+00> : vector<16x32xf32>
    %2 = tpu.matmul %0, %1, %cst {dimension_numbers = #tpu.dot_dimension_numbers<[1], [0], [0], [1], [0, 0, 1, 1], [], []>} : vector<16x32xbf16>, vector<32x32xbf16>, vector<16x32xf32> -> vector<16x32xf32>
    %c0_3 = arith.constant 0 : index
    %c0_4 = arith.constant 0 : index
    %3 = vector.load %arg3[%c0_3, %c0_4] : memref<1x32xf32, #tpu.memory_space<vmem>>, vector<1x32xf32>
    %4 = vector.broadcast %3 : vector<1x32xf32> to vector<16x32xf32>
    %5 = arith.addf %2, %4 : vector<16x32xf32>
    %cst_5 = arith.constant 0.000000e+00 : f32
    %6 = vector.broadcast %cst_5 : f32 to vector<16x32xf32>
    %7 = arith.maximumf %5, %6 : vector<16x32xf32>
    %c0_6 = arith.constant 0 : index
    %c0_7 = arith.constant 0 : index
    %8 = vector.load %arg4[%c0_6, %c0_7] : memref<16x32xf32, #tpu.memory_space<vmem>>, vector<16x32xf32>
    tpu.vector_store %arg4[%c0_6, %c0_7], %7 {strides = array<i32>} : memref<16x32xf32, #tpu.memory_space<vmem>>, vector<16x32xf32>,
    return
  }
  func.func @transform_0(%arg0: i32) -> (i32, i32) {
    %c0_i32 = arith.constant 0 : i32
    %c0_i32_0 = arith.constant 0 : i32
    return %arg0, %c0_i32 : i32, i32
  }
  func.func @transform_1(%arg0: i32) -> (i32, i32) {
    %c0_i32 = arith.constant 0 : i32
    %c0_i32_0 = arith.constant 0 : i32
    %c0_i32_1 = arith.constant 0 : i32
    return %c0_i32, %c0_i32_0 : i32, i32
  }
  func.func @transform_2(%arg0: i32) -> (i32, i32) {
    %c0_i32 = arith.constant 0 : i32
    %c0_i32_0 = arith.constant 0 : i32
    %c0_i32_1 = arith.constant 0 : i32
    return %c0_i32, %c0_i32_0 : i32, i32
  }
  func.func @transform_3(%arg0: i32) -> (i32, i32) {
    %c0_i32 = arith.constant 0 : i32
    %c0_i32_0 = arith.constant 0 : i32
    return %arg0, %c0_i32 : i32, i32
  }
}

</mosaic_0001>

<bundles_post_ra>
// kernel: tpu_custom_call.1
= control target key start
LH: loop header
LB: loop body
LE: loop exit
PB: predicated region body
PF: predicated region fallthrough
CT: control target
= control target key end

     0   :  { %8 = vsyncpa [#allocation3], 0  ;;  %s309_s0 = inlined_call_operand.hbm [shape: bf16[16,32], index: 0, kind: input, shape index: {}]   ;;  %s310_s1 = inlined_call_operand.hbm [shape: bf16[32,32], index: 1, kind: input, shape index: {}]   ;;  %s311_s2 = inlined_call_operand.vmem [shape: f32[1,32], index: 2, kind: input, shape index: {}]   ;;  %s312_s3 = inlined_call_operand.hbm [shape: f32[16,32], index: 3, kind: output, shape index: {}]  }
   0x1   :  { %9 = vsyncpa [#allocation6], 0 }
   0x2   :  { %10 = vsyncpa [#allocation4], 0  ;;  %s241_s12 = smov [#allocation2]   ;;  %s169_s16 = scalar_lea.hbm %s309_s0, 128 }
   0x3   :  { %s16_s13 = sshll.u32 %s241_s12, 4  ;;  %p170_p0 = scmp.ne.s32.totalorder %s309_s0, %s169_s16  ;;  %s17_s13 = int_to_ptr.vmem [resolvable:$true] %s16_s13 }
   0x4   :  { %p173_p1 = scmp.lt.u32.totalorder %s169_s16, %s309_s0 }
   0x6   :  { %p175_p2 = pnand %p173_p1, %p170_p0 }
   0x8   :  { %178 = shalt.err (!%p175_p2)
}
   0x9   :  { %s179_s21 = scalar_lea.vmem %s17_s13, 128  ;;  %p184_p4 = scmp.lt.s32.totalorder %s17_s13, %s17_s13 }
   0xa   :  { %p180_p3 = scmp.ne.s32.totalorder %s17_s13, %s179_s21  ;;  %p185_p5 = scmp.lt.s32.totalorder %s179_s21, %s179_s21 }
   0xc   :  { %p186_p6 = por %p185_p5, %p184_p4 }
   0xe   :  { %p187_p7 = pnand %p186_p6, %p180_p3 }
  0x10   :  { %190 = shalt.err (!%p187_p7)
}
  0x11   :  { %s242_s22 = smov 64   ;;  %s243_s23 = smov 4  }
  0x12   :  { %22 = dma.hbm_to_vmem [thread:$0]  %s309_s0, 128, %s17_s13, [#allocation3], %s242_s22, %s242_s22, %s243_s23  }
  0x13   :  { %s244_s26 = smov [#allocation5]   ;;  %s191_s30 = scalar_lea.hbm %s310_s1, 256 }
  0x14   :  { %s28_s27 = sshll.u32 %s244_s26, 4  ;;  %p192_p8 = scmp.ne.s32.totalorder %s310_s1, %s191_s30  ;;  %s29_s27 = int_to_ptr.vmem [resolvable:$true] %s28_s27 }
  0x15   :  { %p195_p9 = scmp.lt.u32.totalorder %s191_s30, %s310_s1 }
  0x17   :  { %p197_p10 = pnand %p195_p9, %p192_p8 }
  0x19   :  { %200 = shalt.err (!%p197_p10)
}
  0x1a   :  { %s201_s8 = scalar_lea.vmem %s29_s27, 256  ;;  %p206_p12 = scmp.lt.s32.totalorder %s29_s27, %s29_s27 }
  0x1b   :  { %p202_p11 = scmp.ne.s32.totalorder %s29_s27, %s201_s8  ;;  %p207_p13 = scmp.lt.s32.totalorder %s201_s8, %s201_s8 }
  0x1d   :  { %p208_p0 = por %p207_p13, %p206_p12 }
  0x1f   :  { %p209_p1 = pnand %p208_p0, %p202_p11 }
  0x21   :  { %212 = shalt.err (!%p209_p1)
}
  0x22   :  { %34 = dma.hbm_to_vmem [thread:$0]  %s310_s1, 256, %s29_s27, [#allocation6], %s242_s22, %s242_s22, %s243_s23  }
  0x23   :  { %235 = dma.done.wait [#allocation3], 128  }
  0x24   :  { %236 = vsyncadd [#allocation3], 4294967168 }
  0x25   :  { %237 = dma.done.wait [#allocation6], 256  }
  0x26   :  { %238 = vsyncadd [#allocation6], 4294967040  ;;  %v245_v0 = vmov 0.0   ;;  %vm246_vm0 = vmmov 0   ;;  %v166_v1 = vld [vmem:[#allocation5] sm:$0xff]   ;;  %v167_v2 = vld [vmem:[#allocation5 + $0x8] sm:$0xff]  }
  0x27   :  { %149 = vmatprep.subr.bf16.mxu0 %v245_v0  ;;  %153 = vmatprep.mubr.msk.bf16.mxu0 %vm246_vm0, %v245_v0  ;;  %v168_v3 = vld [vmem:[#allocation2] sm:$0xff]   ;;  %vm74_vm1 = vcmask 261120   ;;  %s247_s1 = smov [#allocation7]  }
  0x28   :  { %150 = vmatpush3.bf16.msra.mxu0 %v166_v1  ;;  %v141_v4 = vld [vmem:[%s311_s2] ss:$0 sm:$0xff]  ;;  %s128_s12 = sshll.u32 %s247_s1, 4  ;;  %s129_s12 = int_to_ptr.vmem [resolvable:$true] %s128_s12 }
  0x29   :  { %151 = vmatprep.subr.bf16.mxu0 %v245_v0  ;;  %s213_s13 = scalar_lea.vmem %s129_s12, 256  ;;  %p218_p3 = scmp.lt.s32.totalorder %s129_s12, %s129_s12 }
  0x2a   :  { %p214_p2 = scmp.ne.s32.totalorder %s129_s12, %s213_s13  ;;  %p219_p4 = scmp.lt.s32.totalorder %s213_s13, %s213_s13 }
  0x2c   :  { %152 = vmatpush3.bf16.msra.mxu0 %v167_v2  ;;  %p220_p5 = por %p219_p4, %p218_p3 }
  0x2e   :  { %p221_p6 = pnand %p220_p5, %p214_p2 }
  0x2f   :  { %154 = vmatmul.mubr.msk.bf16.vlgmr.msra.gmra.mrb[0].mxu0 %vm74_vm1, %v168_v3 }
 0x102   :  { %v112_v5 = vpop.f32.mrb[0].mxu0 }
 0x103   :  { %v113_v6 = vadd.f32 %v141_v4, %v112_v5  ;;  %v155_v7 = vpop.f32.mrb[1].mxu0 }
 0x104   :  { %v115_v8 = vpop.f32.mrb[2].mxu0 }
 0x105   :  { %v119_v9 = vmax.f32 %v113_v6, 0.0  ;;  %v116_v10 = vadd.f32 %v141_v4, %v115_v8  ;;  %v156_v11 = vpop.f32.mrb[3].mxu0 }
 0x107   :  { %121 = vst.msk [vmem:[#allocation7] sm:$0xff] %vm74_vm1, %v119_v9  ;;  %v120_v12 = vmax.f32 %v116_v10, 0.0 }
 0x109   :  { %122 = vst.msk [vmem:[#allocation7 + $0x8] sm:$0xff] %vm74_vm1, %v120_v12 }
 0x10a   :  { %224 = shalt.err (!%p221_p6)
}
 0x10b   :  { %s225_s15 = scalar_lea.hbm %s312_s3, 256 }
 0x10c   :  { %p226_p7 = scmp.ne.s32.totalorder %s312_s3, %s225_s15  ;;  %p229_p8 = scmp.lt.u32.totalorder %s225_s15, %s312_s3 }
 0x10e   :  { %p231_p9 = pnand %p229_p8, %p226_p7 }
 0x110   :  { %234 = shalt.err (!%p231_p9)
}
 0x111   :  { %s248_s20 = smov 128   ;;  %s249_s21 = smov 8  }
 0x112   :  { %134 = dma.vmem_to_hbm [thread:$0]  %s129_s12, 256, %s312_s3, [#allocation4], %s248_s20, %s248_s20, %s249_s21  }
 0x113   :  { %239 = dma.done.wait [#allocation4], 256  }
 0x114   :  { %240 = vsyncadd [#allocation4], 4294967040 }
 0x115   :  { %138 = vsyncpa [#allocation3], 1 }
 0x116   :  { %139 = vsyncpa [#allocation6], 1 }
 0x117   :  { %140 = vsyncpa [#allocation4], 1 }

</bundles_post_ra>
